<compile_context>
chip_gen: v7x
topology: tpu7x:2x2x1
jax: 0.10.0
libtpu: 0.0.40
codegen_flags: <defaults>
</compile_context>

<pallas_src>
import jax
import jax.numpy as jnp
from jax.experimental import pallas as pl
from jax.experimental.pallas import tpu as pltpu


def _round_up(x, m):
    return ((x + m - 1) // m) * m


def _sublane_multiple(dtype):
    # f32 -> 8, bf16/f16 -> 16, int8/fp8 -> 32 (sub-32-bit dtypes pack along sublanes).
    return max(8, 32 // jnp.dtype(dtype).itemsize)


def _maybe_cast(v, dtype):
    return v if dtype is None else v.astype(dtype)


def _make_single_k_kernel(compute_dtype):
    """relu(x @ w + b) with the whole K reduction in one tile: no accumulator scratch."""

    def kernel(x_ref, w_ref, b_ref, o_ref):
        acc = jnp.dot(
            _maybe_cast(x_ref[...], compute_dtype),
            _maybe_cast(w_ref[...], compute_dtype),
            preferred_element_type=jnp.float32,
        )
        out = acc + b_ref[...].astype(jnp.float32)   # (1, tn) broadcasts over tm rows
        o_ref[...] = jnp.maximum(out, 0.0).astype(o_ref.dtype)

    return kernel


def _make_multi_k_kernel(compute_dtype, x_resident):
    """K-tiled matmul with an f32 VMEM accumulator; bias+ReLU epilogue on the last K step."""

    def kernel(x_ref, w_ref, b_ref, o_ref, acc_ref):
        k = pl.program_id(2)

        @pl.when(k == 0)
        def _():
            acc_ref[...] = jnp.zeros_like(acc_ref)

        # Resident X: x_ref is (Kt, tm, tk), held in VMEM for the whole grid; pick the
        # current K slab by leading-axis indexing.  Otherwise x_ref is the (tm, tk) tile.
        x = x_ref[k] if x_resident else x_ref[...]

        # Pure MXU push in the steady state (bf16 operands, f32 accumulation).
        acc_ref[...] += jnp.dot(
            _maybe_cast(x, compute_dtype),
            _maybe_cast(w_ref[...], compute_dtype),
            preferred_element_type=jnp.float32,
        )

        @pl.when(k == pl.num_programs(2) - 1)
        def _():
            out = acc_ref[...] + b_ref[...].astype(jnp.float32)
            o_ref[...] = jnp.maximum(out, 0.0).astype(o_ref.dtype)

    return kernel


def layer_with_parameter(x, weight, bias, *, tm_max=512, tn_max=512, tk_max=1024,
                         compute_dtype=jnp.bfloat16):
    """Equivalent of LayerWithParameter.forward: relu(x @ weight + bias).

    compute_dtype: dtype fed to the MXU (bf16 by default; None keeps an exact f32 dot).
    """
    batch, in_units = x.shape
    in_units_w, units = weight.shape
    assert in_units == in_units_w
    assert bias.shape == (units,)

    # ---- tile selection -----------------------------------------------------------
    sub = _sublane_multiple(x.dtype)               # 8 (f32) / 16 (bf16) / 32 (i8, fp8)
    tm = min(tm_max, _round_up(batch, sub))
    tn = min(tn_max, _round_up(units, 128))
    tk = min(tk_max, _round_up(in_units, 128))

    mp = _round_up(batch, tm)
    np_ = _round_up(units, tn)
    kp = _round_up(in_units, tk)

    # v7x has 2 TensorCores: if the whole output is a single (i, j) tile but N >= 256,
    # halve tn so the "parallel" j axis has 2 blocks to shard across the cores.
    if mp == tm and np_ == tn and np_ >= 256 and (np_ // 2) % 128 == 0:
        tn = np_ // 2

    n_k = kp // tk
    single_k = n_k == 1

    # ---- pad only when actually needed (zero padding is exact for matmul+bias+relu) --
    if mp != batch or kp != in_units:
        x_p = jnp.pad(x, ((0, mp - batch), (0, kp - in_units)))
    else:
        x_p = x
    if kp != in_units or np_ != units:
        w_p = jnp.pad(weight, ((0, kp - in_units), (0, np_ - units)))
    else:
        w_p = weight
    b_p = (bias if np_ == units else jnp.pad(bias, (0, np_ - units))).reshape(1, np_)

    isz = jnp.dtype(x.dtype).itemsize

    if single_k:
        grid = (mp // tm, np_ // tn)
        kernel = _make_single_k_kernel(compute_dtype)
        in_specs = [
            pl.BlockSpec((tm, kp), lambda i, j: (i, 0)),
            pl.BlockSpec((kp, tn), lambda i, j: (0, j)),
            pl.BlockSpec((1, tn), lambda i, j: (0, j)),
        ]
        out_specs = pl.BlockSpec((tm, tn), lambda i, j: (i, j))
        scratch_shapes = []
        dims = ("parallel", "parallel")
        x_arg = x_p
        x_block_bytes = tm * kp * isz
        acc_bytes = 0
    else:
        # Resident X: whole batch in one M tile, reuse across several N tiles, and the
        # double-buffered copy fits comfortably in VMEM.
        x_resident = (mp == tm) and (np_ // tn > 1) and (2 * tm * kp * isz <= (8 << 20))
        grid = (mp // tm, np_ // tn, n_k)
        kernel = _make_multi_k_kernel(compute_dtype, x_resident)
        if x_resident:
            # (tm, kp) -> (Kt, tm, tk): cheap wrapper reshape of the small X operand so
            # the kernel indexes the K slab on the leading axis.
            x_arg = x_p.reshape(tm, n_k, tk).transpose(1, 0, 2)
            x_spec = pl.BlockSpec((n_k, tm, tk), lambda i, j, k: (0, 0, 0))
            x_block_bytes = n_k * tm * tk * isz
        else:
            x_arg = x_p
            x_spec = pl.BlockSpec((tm, tk), lambda i, j, k: (i, k))
            x_block_bytes = tm * tk * isz
        in_specs = [
            x_spec,
            # TODO(synk): optionally pipeline_mode=pl.Buffered(3) on W for tiny-tm shapes.
            pl.BlockSpec((tk, tn), lambda i, j, k: (k, j)),
            # Bias block is resident across the K axis (same block for every k).
            pl.BlockSpec((1, tn), lambda i, j, k: (0, j)),
        ]
        out_specs = pl.BlockSpec((tm, tn), lambda i, j, k: (i, j))
        scratch_shapes = [pltpu.VMEM((tm, tn), jnp.float32)]
        dims = ("parallel", "parallel", "arbitrary")
        acc_bytes = tm * tn * 4

    # ---- VMEM budget (double-buffered blocks + accumulator), capped for v7x ----------
    w_block_bytes = (kp if single_k else tk) * tn * jnp.dtype(weight.dtype).itemsize
    o_block_bytes = tm * tn * isz
    b_block_bytes = tn * jnp.dtype(bias.dtype).itemsize
    total = 2 * (x_block_bytes + w_block_bytes + o_block_bytes + b_block_bytes) + acc_bytes
    # Scoped-VMEM defaults: 16 MiB (v5e) / 32 MiB (v6e, v7x); physical 128/128/64 MiB.
    vmem_limit_bytes = int(min(48 << 20, max(32 << 20, int(1.5 * total))))

    out_p = pl.pallas_call(
        kernel,
        out_shape=jax.ShapeDtypeStruct((mp, np_), x.dtype),
        grid_spec=pltpu.PrefetchScalarGridSpec(
            num_scalar_prefetch=0,
            grid=grid,
            in_specs=in_specs,
            out_specs=out_specs,
            scratch_shapes=scratch_shapes,
        ),
        compiler_params=pltpu.CompilerParams(
            dimension_semantics=dims,
            vmem_limit_bytes=vmem_limit_bytes,
        ),
    )(x_arg, w_p, b_p)

    if mp != batch or np_ != units:
        out_p = out_p[:batch, :units]
    return out_p


if __name__ == "__main__":
    key = jax.random.PRNGKey(0)
    kx, kw = jax.random.split(key)

    # Small shapes consistent with the module: batch=8, in_units=32, units=64.
    batch, in_units, units = 8, 32, 64
    x = jax.random.normal(kx, (batch, in_units), dtype=jnp.float32)
    # nn.Parameter shapes: weight ~ randn(in_units, units), bias = zeros(units).
    weight = jax.random.normal(kw, (in_units, units), dtype=jnp.float32)
    bias = jnp.zeros((units,), dtype=jnp.float32)

    out = jax.block_until_ready(layer_with_parameter(x, weight, bias))
    ref = jnp.maximum(jnp.matmul(x, weight) + bias, 0.0)
    assert out.shape == (batch, units)
    # bf16 MXU operands: tolerate the documented small rounding error (~0.2-0.5% rel).
    assert jnp.allclose(out, ref, atol=1e-1, rtol=5e-2), float(jnp.max(jnp.abs(out - ref)))

    # Exercise the multi-K-tile accumulator path and the resident-X path with small tiles.
    k2x, k2w, k2b = jax.random.split(jax.random.PRNGKey(1), 3)
    b2, kdim2, n2 = 8, 512, 384
    x2 = jax.random.normal(k2x, (b2, kdim2), dtype=jnp.float32)
    w2 = jax.random.normal(k2w, (kdim2, n2), dtype=jnp.float32)
    bias2 = jax.random.normal(k2b, (n2,), dtype=jnp.float32)
    out2 = jax.block_until_ready(
        layer_with_parameter(x2, w2, bias2, tn_max=128, tk_max=128))
    ref2 = jnp.maximum(jnp.matmul(x2, w2) + bias2, 0.0)
    assert out2.shape == (b2, n2)
    assert jnp.allclose(out2, ref2, atol=5e-1, rtol=5e-2), float(jnp.max(jnp.abs(out2 - ref2)))

    print("KERNEL_OK")
</pallas_src>

<mosaic_0001>
module attributes {stable_mosaic.version = 11 : i64} {
  func.func @kernel(%arg0: i32, %arg1: i32, %arg2: memref<8x128xf32, #tpu.memory_space<vmem>>, %arg3: memref<128x128xf32, #tpu.memory_space<vmem>>, %arg4: memref<1x128xf32, #tpu.memory_space<vmem>>, %arg5: memref<8x128xf32, #tpu.memory_space<vmem>>) attributes {dimension_semantics = [#tpu.dimension_semantics<parallel>, #tpu.dimension_semantics<parallel>], iteration_bounds = array<i64: 1, 1>, scalar_prefetch = 0 : i64, scratch_operands = 0 : i64, tpu.core_type = #tpu.core_type<tc>, window_params = [{transform_indices = @transform_0, window_bounds = array<i64: 8, 128>}, {transform_indices = @transform_1, window_bounds = array<i64: 128, 128>}, {transform_indices = @transform_2, window_bounds = array<i64: 1, 128>}, {transform_indices = @transform_3, window_bounds = array<i64: 8, 128>}]} {
    %c0 = arith.constant 0 : index
    %c0_0 = arith.constant 0 : index
    %0 = vector.load %arg2[%c0, %c0_0] : memref<8x128xf32, #tpu.memory_space<vmem>>, vector<8x128xf32>
    %1 = arith.truncf %0 : vector<8x128xf32> to vector<8x128xbf16>
    %c0_1 = arith.constant 0 : index
    %c0_2 = arith.constant 0 : index
    %2 = vector.load %arg3[%c0_1, %c0_2] : memref<128x128xf32, #tpu.memory_space<vmem>>, vector<128x128xf32>
    %3 = arith.truncf %2 : vector<128x128xf32> to vector<128x128xbf16>
    %cst = arith.constant dense<0.000000e+00> : vector<8x128xf32>
    %4 = tpu.matmul %1, %3, %cst {dimension_numbers = #tpu.dot_dimension_numbers<[1], [0], [0], [1], [0, 0, 1, 1], [], []>} : vector<8x128xbf16>, vector<128x128xbf16>, vector<8x128xf32> -> vector<8x128xf32>
    %c0_3 = arith.constant 0 : index
    %c0_4 = arith.constant 0 : index
    %5 = vector.load %arg4[%c0_3, %c0_4] : memref<1x128xf32, #tpu.memory_space<vmem>>, vector<1x128xf32>
    %6 = vector.broadcast %5 : vector<1x128xf32> to vector<8x128xf32>
    %7 = arith.addf %4, %6 : vector<8x128xf32>
    %cst_5 = arith.constant 0.000000e+00 : f32
    %8 = vector.broadcast %cst_5 : f32 to vector<8x128xf32>
    %9 = arith.maximumf %7, %8 : vector<8x128xf32>
    %c0_6 = arith.constant 0 : index
    %c0_7 = arith.constant 0 : index
    %10 = vector.load %arg5[%c0_6, %c0_7] : memref<8x128xf32, #tpu.memory_space<vmem>>, vector<8x128xf32>
    tpu.vector_store %arg5[%c0_6, %c0_7], %9 {strides = array<i32>} : memref<8x128xf32, #tpu.memory_space<vmem>>, vector<8x128xf32>,
    return
  }
  func.func @transform_0(%arg0: i32, %arg1: i32) -> (i32, i32) {
    %c0_i32 = arith.constant 0 : i32
    %c0_i32_0 = arith.constant 0 : i32
    return %arg0, %c0_i32 : i32, i32
  }
  func.func @transform_1(%arg0: i32, %arg1: i32) -> (i32, i32) {
    %c0_i32 = arith.constant 0 : i32
    %c0_i32_0 = arith.constant 0 : i32
    return %c0_i32, %arg1 : i32, i32
  }
  func.func @transform_2(%arg0: i32, %arg1: i32) -> (i32, i32) {
    %c0_i32 = arith.constant 0 : i32
    %c0_i32_0 = arith.constant 0 : i32
    return %c0_i32, %arg1 : i32, i32
  }
  func.func @transform_3(%arg0: i32, %arg1: i32) -> (i32, i32) {
    %c0_i32 = arith.constant 0 : i32
    return %arg0, %arg1 : i32, i32
  }
}

</mosaic_0001>

<bundles_post_ra>
// kernel: tpu_custom_call.1
= control target key start
LH: loop header
LB: loop body
LE: loop exit
PB: predicated region body
PF: predicated region fallthrough
CT: control target
= control target key end

     0   :  { %8 = vsyncpa [#allocation3], 0  ;;  %s315_s0 = inlined_call_operand.hbm [shape: f32[8,128], index: 0, kind: input, shape index: {}]   ;;  %s316_s1 = inlined_call_operand.hbm [shape: f32[128,128], index: 1, kind: input, shape index: {}]   ;;  %s317_s2 = inlined_call_operand.vmem [shape: f32[1,128], index: 2, kind: input, shape index: {}]   ;;  %s318_s3 = inlined_call_operand.hbm [shape: f32[8,128], index: 3, kind: output, shape index: {}]  }
   0x1   :  { %9 = vsyncpa [#allocation6], 0 }
   0x2   :  { %10 = vsyncpa [#allocation4], 0  ;;  %s242_s12 = smov [#allocation2]   ;;  %s243_s14 = smov [#allocation5]  }
   0x3   :  { %s17_s13 = sshll.u32 %s242_s12, 4  ;;  %s26_s15 = sshll.u32 %s243_s14, 4  ;;  %s18_s13 = int_to_ptr.vmem [resolvable:$true] %s17_s13  ;;  %s269_s15 = int_to_ptr.vmem [resolvable:$true] %s26_s15 }
   0x4   :  { %s170_s18 = scalar_lea.hbm %s315_s0, 128 }
   0x5   :  { %p171_p0 = scmp.ne.s32.totalorder %s315_s0, %s170_s18  ;;  %p174_p1 = scmp.lt.u32.totalorder %s170_s18, %s315_s0 }
   0x7   :  { %p176_p2 = pnand %p174_p1, %p171_p0 }
   0x9   :  { %179 = shalt.err (!%p176_p2)
}
   0xa   :  { %s180_s23 = scalar_lea.vmem %s18_s13, 128  ;;  %p185_p4 = scmp.lt.s32.totalorder %s18_s13, %s18_s13 }
   0xb   :  { %p181_p3 = scmp.ne.s32.totalorder %s18_s13, %s180_s23  ;;  %p186_p5 = scmp.lt.s32.totalorder %s180_s23, %s180_s23 }
   0xd   :  { %p187_p6 = por %p186_p5, %p185_p4 }
   0xf   :  { %p188_p7 = pnand %p187_p6, %p181_p3 }
  0x11   :  { %191 = shalt.err (!%p188_p7)
}
  0x12   :  { %20 = dma.hbm_to_vmem [thread:$0]  %s315_s0, 128, %s18_s13, [#allocation3]  }
  0x13   :  { %s192_s28 = scalar_lea.hbm %s316_s1, 2048 }
  0x14   :  { %p193_p8 = scmp.ne.s32.totalorder %s316_s1, %s192_s28  ;;  %p196_p9 = scmp.lt.u32.totalorder %s192_s28, %s316_s1 }
  0x16   :  { %p198_p10 = pnand %p196_p9, %p193_p8 }
  0x18   :  { %201 = shalt.err (!%p198_p10)
}
  0x19   :  { %s202_s6 = scalar_lea.vmem %s269_s15, 2048  ;;  %p207_p12 = scmp.lt.s32.totalorder %s269_s15, %s269_s15 }
  0x1a   :  { %p203_p11 = scmp.ne.s32.totalorder %s269_s15, %s202_s6  ;;  %p208_p13 = scmp.lt.s32.totalorder %s202_s6, %s202_s6 }
  0x1c   :  { %p209_p0 = por %p208_p13, %p207_p12 }
  0x1e   :  { %p210_p1 = pnand %p209_p0, %p203_p11 }
  0x20   :  { %213 = shalt.err (!%p210_p1)
}
  0x21   :  { %s244_s0 = smov 128   ;;  %s245_s7 = smov 8  }
  0x22   :  { %32 = dma.hbm_to_vmem [thread:$0]  %s316_s1, 2048, %s269_s15, [#allocation6], %s244_s0, %s244_s0, %s245_s7  }
  0x23   :  { %236 = dma.done.wait [#allocation3], 128  }
  0x24   :  { %237 = vsyncadd [#allocation3], 4294967168 }
  0x25   :  { %238 = dma.done.wait [#allocation6], 2048  }
  0x26   :  { %239 = vsyncadd [#allocation6], 4294965248  ;;  %v246_v0 = vmov 0.0   ;;  %vm247_vm0 = vmmov 0   ;;  %v44_v1 = vld [vmem:[#allocation5] sm:$0xff]  ;;  %v45_v2 = vld [vmem:[#allocation5 + $0x8] sm:$0xff] }
  0x27   :  { %143 = vmatprep.subr.bf16.mxu0 %v246_v0  ;;  %159 = vmatprep.mubr.msk.bf16.mxu0 %vm247_vm0, %v246_v0  ;;  %v46_v3 = vld [vmem:[#allocation5 + $0x10] sm:$0xff]  ;;  %v60_v4 = vpack.c.bf16 %v45_v2, %v44_v1  ;;  %v47_v5 = vld [vmem:[#allocation5 + $0x18] sm:$0xff]  ;;  %v48_v7 = vld [vmem:[#allocation5 + $0x20] sm:$0xff]  ;;  %s248_s11 = smov [#allocation7]  }
  0x28   :  { %v61_v6 = vpack.c.bf16 %v47_v5, %v46_v3  ;;  %v49_v8 = vld [vmem:[#allocation5 + $0x28] sm:$0xff]  ;;  %v50_v10 = vld [vmem:[#allocation5 + $0x30] sm:$0xff]  ;;  %v51_v11 = vld [vmem:[#allocation5 + $0x38] sm:$0xff]  ;;  %s123_s12 = sshll.u32 %s248_s11, 4  ;;  %s124_s12 = int_to_ptr.vmem [resolvable:$true] %s123_s12 }
  0x29   :  { %144 = vmatpush3.bf16.msra.mxu0 %v60_v4  ;;  %v62_v9 = vpack.c.bf16 %v49_v8, %v48_v7  ;;  %v63_v12 = vpack.c.bf16 %v51_v11, %v50_v10  ;;  %v52_v13 = vld [vmem:[#allocation5 + $0x40] sm:$0xff]  ;;  %v53_v14 = vld [vmem:[#allocation5 + $0x48] sm:$0xff]  ;;  %v54_v16 = vld [vmem:[#allocation5 + $0x50] sm:$0xff]  ;;  %s214_s13 = scalar_lea.vmem %s124_s12, 128  ;;  %p219_p3 = scmp.lt.s32.totalorder %s124_s12, %s124_s12 }
  0x2a   :  { %145 = vmatprep.subr.bf16.mxu0 %v246_v0  ;;  %v64_v15 = vpack.c.bf16 %v53_v14, %v52_v13  ;;  %v55_v17 = vld [vmem:[#allocation5 + $0x58] sm:$0xff]  ;;  %v56_v19 = vld [vmem:[#allocation5 + $0x60] sm:$0xff]  ;;  %v57_v20 = vld [vmem:[#allocation5 + $0x68] sm:$0xff]  ;;  %p215_p2 = scmp.ne.s32.totalorder %s124_s12, %s214_s13  ;;  %p220_p4 = scmp.lt.s32.totalorder %s214_s13, %s214_s13 }
  0x2b   :  { %v65_v18 = vpack.c.bf16 %v55_v17, %v54_v16  ;;  %v66_v21 = vpack.c.bf16 %v57_v20, %v56_v19  ;;  %v58_v22 = vld [vmem:[#allocation5 + $0x70] sm:$0xff]  ;;  %v59_v23 = vld [vmem:[#allocation5 + $0x78] sm:$0xff] }
  0x2c   :  { %v67_v24 = vpack.c.bf16 %v59_v23, %v58_v22  ;;  %v42_v25 = vld [vmem:[#allocation2] sm:$0xff]  ;;  %p221_p5 = por %p220_p4, %p219_p3 }
  0x2d   :  { %146 = vmatpush3.bf16.msra.mxu0 %v61_v6  ;;  %v43_v26 = vpack.c.bf16 %v42_v25, %v42_v25  ;;  %v133_v27 = vld [vmem:[%s317_s2] ss:$0 sm:$0xff] }
  0x2e   :  { %147 = vmatprep.subr.bf16.mxu0 %v246_v0  ;;  %p222_p6 = pnand %p221_p5, %p215_p2 }
  0x31   :  { %148 = vmatpush3.bf16.msra.mxu0 %v62_v9 }
  0x32   :  { %149 = vmatprep.subr.bf16.mxu0 %v246_v0 }
  0x35   :  { %150 = vmatpush3.bf16.msra.mxu0 %v63_v12 }
  0x36   :  { %151 = vmatprep.subr.bf16.mxu0 %v246_v0 }
  0x39   :  { %152 = vmatpush3.bf16.msra.mxu0 %v64_v15 }
  0x3a   :  { %153 = vmatprep.subr.bf16.mxu0 %v246_v0 }
  0x3d   :  { %154 = vmatpush3.bf16.msra.mxu0 %v65_v18 }
  0x3e   :  { %155 = vmatprep.subr.bf16.mxu0 %v246_v0 }
  0x41   :  { %156 = vmatpush3.bf16.msra.mxu0 %v66_v21 }
  0x42   :  { %157 = vmatprep.subr.bf16.mxu0 %v246_v0 }
  0x45   :  { %158 = vmatpush3.bf16.msra.mxu0 %v67_v24 }
  0x48   :  { %160 = vmatmul.mubr.bf16.vlgmr.msra.gmra.mrb[0].mxu0 %v43_v26 }
 0x11b   :  { %v109_v28 = vpop.f32.mrb[0].mxu0 }
 0x11c   :  { %v110_v29 = vadd.f32 %v133_v27, %v109_v28  ;;  %v161_v30 = vpop.f32.mrb[1].mxu0 }
 0x11d   :  { %v112_v31 = vpop.f32.mrb[2].mxu0 }
 0x11e   :  { %v115_v32 = vmax.f32 %v110_v29, 0.0  ;;  %v162_v33 = vpop.f32.mrb[3].mxu0 }
 0x120   :  { %116 = vst [vmem:[#allocation7] sm:$0xff] %v115_v32 }
 0x121   :  { %225 = shalt.err (!%p222_p6)
}
 0x122   :  { %s226_s2 = scalar_lea.hbm %s318_s3, 128 }
 0x123   :  { %p227_p7 = scmp.ne.s32.totalorder %s318_s3, %s226_s2  ;;  %p230_p8 = scmp.lt.u32.totalorder %s226_s2, %s318_s3 }
 0x125   :  { %p232_p9 = pnand %p230_p8, %p227_p7 }
 0x127   :  { %235 = shalt.err (!%p232_p9)
}
 0x128   :  { %126 = dma.vmem_to_hbm [thread:$0]  %s124_s12, 128, %s318_s3, [#allocation4]  }
 0x129   :  { %240 = dma.done.wait [#allocation4], 128  }
 0x12a   :  { %241 = vsyncadd [#allocation4], 4294967168 }
 0x12b   :  { %130 = vsyncpa [#allocation3], 1 }
 0x12c   :  { %131 = vsyncpa [#allocation6], 1 }
 0x12d   :  { %132 = vsyncpa [#allocation4], 1 }

</bundles_post_ra>
